<compile_context>
chip_gen: v5e
topology: v5e:2x2
jax: 0.10.0
libtpu: 0.0.40
codegen_flags: <defaults>
</compile_context>

<pallas_src>
import math

import jax
import jax.numpy as jnp
from jax import lax
from jax.experimental import pallas as pl
from jax.experimental.pallas import tpu as pltpu

_HALF_LOG_2PI = 0.5 * math.log(2.0 * math.pi)


def _elu(v):
    # torch.nn.functional.elu with alpha=1.0. exp argument clamped to <= 0 so large
    # positive pre-activations never overflow on the discarded branch.
    return jnp.where(v > 0, v, jnp.exp(jnp.minimum(v, 0.0)) - 1.0)


def gaussian_policy_kernel(x_ref,
                           w1_ref, b1_ref,
                           w2_ref, b2_ref,
                           w3_ref, b3_ref,
                           wh_ref, bh_ref,
                           eps_ref,
                           a_ref, logp_ref):
    """One batch tile. Hidden activations are (features, batch_tile): batch on lanes.

    x_ref:   (TB, S)  native layout (batch on sublanes); contracted without a transpose
    eps_ref: (TB, A)  native layout; transposed in-kernel (XLU slot otherwise idle)
    a_ref:   (A, TB)  lane-dense output
    logp_ref:(1, TB)  lane-dense output
    """
    w_dtype = w1_ref.dtype
    A = a_ref.shape[0]                                 # action_size

    x = x_ref[...].astype(w_dtype)                     # (TB, S)
    # fc1: contract the state dim of the untransposed x tile -> (H, TB), batch on lanes.
    h = _elu(lax.dot_general(w1_ref[...], x,
                             dimension_numbers=(((1,), (1,)), ((), ())),
                             preferred_element_type=jnp.float32) + b1_ref[...])
    h = _elu(jnp.dot(w2_ref[...], h.astype(w_dtype),
                     preferred_element_type=jnp.float32) + b2_ref[...])
    h = _elu(jnp.dot(w3_ref[...], h.astype(w_dtype),
                     preferred_element_type=jnp.float32) + b3_ref[...])

    # Fused mu | log_std head: a single (2A, H) @ (H, TB) matmul.
    # TODO(synk): fold biases into the matmuls (augmented ones-row) only if a bundle
    # dump shows the per-step (H,1)->(H,TB) lane-broadcast is a bottleneck.
    y = jnp.dot(wh_ref[...], h.astype(w_dtype),
                preferred_element_type=jnp.float32) + bh_ref[...]            # (2A, TB)
    mu = y[:A, :]
    log_std = jnp.clip(y[A:, :], -20.0, 2.0)
    std = jnp.exp(log_std)

    eps = eps_ref[...].astype(jnp.float32).T           # (TB, A) -> (A, TB)
    a = mu + std * eps                                 # Normal(mu, std).rsample()

    # Normal(mu, std).log_prob(a).sum over actions; (a - mu)/std == eps exactly.
    log_prob = -0.5 * eps * eps - log_std - _HALF_LOG_2PI

    a_ref[...] = a.astype(a_ref.dtype)
    logp_ref[...] = jnp.sum(log_prob, axis=0, keepdims=True).astype(logp_ref.dtype)


def _round_up(n, m):
    return ((n + m - 1) // m) * m


def prepare_kernel_params(params, compute_dtype=jnp.float32):
    """Kernel-layout params: weights (out, in) in compute_dtype, biases (out, 1)
    float32, and the mu / log_std heads fused into one weight/bias pair.
    Use compute_dtype=jnp.bfloat16 on v6e/v7x; keep float32 on v5e."""
    w_head = jnp.concatenate([params["w4"], params["wls"]], axis=0)
    b_head = jnp.concatenate([params["b4"], params["bls"]], axis=0)

    def w(v):
        return v.astype(compute_dtype)

    def b(v):
        return v.astype(jnp.float32).reshape(-1, 1)

    return dict(
        w1=w(params["w1"]), b1=b(params["b1"]),
        w2=w(params["w2"]), b2=b(params["b2"]),
        w3=w(params["w3"]), b3=b(params["b3"]),
        w_head=w(w_head), b_head=b(b_head),
    )


def gaussian_policy_forward(x, kparams, eps, *, block_b=2048,
                            out_dtype=jnp.float32, lane_major_out=False):
    """GaussianPolicy stochastic forward (conditional_dev=True, existing_a=None).

    x:   (B, state_size) array (supply bf16 on v6e/v7x to halve input HBM bytes)
    eps: (B, action_size) standard-normal noise (rsample reparameterization, kept f32)
    Returns (a, logp_pi):
      lane_major_out=False (default, module-compatible): a (B, A), logp_pi (B,)
      lane_major_out=True  (no extra transpose pass):    a (A, B), logp_pi (B,)
    """
    B, S = x.shape
    H = kparams["w1"].shape[0]
    A = kparams["w_head"].shape[0] // 2
    w_dtype = kparams["w1"].dtype

    # Batch tile on the 128-wide lane axis. Large default tile amortizes the
    # ~0.35 us per-grid-step overhead; cap so the grid keeps >= 2 tiles whenever the
    # batch allows it (lets "parallel" shard tiles across v7x's two TensorCores).
    TB = min(_round_up(block_b, 128), _round_up(B, 128))
    if _round_up(B, 128) >= 256:
        TB = min(TB, max(128, _round_up(pl.cdiv(B, 2), 128)))
    grid_b = pl.cdiv(B, TB)
    Bp = grid_b * TB

    # Native layouts, no wrapper transpose. Pad the batch tail only when B is not a
    # multiple of TB (never on aligned large batches); padded columns are independent
    # per-column garbage that is sliced away below.
    x_in = x
    eps_in = eps.astype(jnp.float32)
    if Bp != B:
        x_in = jnp.pad(x_in, ((0, Bp - B), (0, 0)))
        eps_in = jnp.pad(eps_in, ((0, Bp - B), (0, 0)))

    batch_tile_in = lambda i: (i, 0)    # x / eps: tile over batch (sublane dim)
    batch_tile_out = lambda i: (0, i)   # outputs: tile over batch (lane dim)
    resident = lambda i: (0, 0)         # weights/biases: DMA once, stay in VMEM

    flops = 2 * Bp * (S * H + 2 * H * H + 2 * A * H)
    transcendentals = Bp * (3 * H + A)            # ELU exps + exp(log_std)
    itemsize = jnp.dtype(w_dtype).itemsize
    bytes_accessed = (Bp * (S * jnp.dtype(x.dtype).itemsize + 4 * A)        # x, eps in
                      + Bp * (A * jnp.dtype(out_dtype).itemsize + 4)        # a, logp out
                      + itemsize * H * (S + 2 * H + 2 * A)                  # weights
                      + 4 * (3 * H + 2 * A))                                # biases

    a_t, logp_t = pl.pallas_call(
        gaussian_policy_kernel,
        grid=(grid_b,),
        in_specs=[
            pl.BlockSpec((TB, S), batch_tile_in),     # x, native (batch, state)
            pl.BlockSpec((H, S), resident),           # w1
            pl.BlockSpec((H, 1), resident),           # b1
            pl.BlockSpec((H, H), resident),           # w2
            pl.BlockSpec((H, 1), resident),           # b2
            pl.BlockSpec((H, H), resident),           # w3
            pl.BlockSpec((H, 1), resident),           # b3
            pl.BlockSpec((2 * A, H), resident),       # fused mu|log_std weight
            pl.BlockSpec((2 * A, 1), resident),       # fused mu|log_std bias
            pl.BlockSpec((TB, A), batch_tile_in),     # eps, native (batch, action)
        ],
        out_specs=(
            pl.BlockSpec((A, TB), batch_tile_out),    # a (action, batch)
            pl.BlockSpec((1, TB), batch_tile_out),    # logp (1, batch)
        ),
        out_shape=(
            jax.ShapeDtypeStruct((A, Bp), out_dtype),
            jax.ShapeDtypeStruct((1, Bp), jnp.float32),
        ),
        compiler_params=pltpu.CompilerParams(
            dimension_semantics=("parallel",)),
        cost_estimate=pl.CostEstimate(
            flops=flops,
            transcendentals=transcendentals,
            bytes_accessed=bytes_accessed),
    )(
        x_in,
        kparams["w1"], kparams["b1"],
        kparams["w2"], kparams["b2"],
        kparams["w3"], kparams["b3"],
        kparams["w_head"], kparams["b_head"],
        eps_in,
    )

    logp_pi = logp_t[0, :B]                 # (B,)
    if lane_major_out:
        return a_t[:, :B], logp_pi          # (A, B): skips the extra transpose pass
    return a_t[:, :B].T, logp_pi            # (B, A): module-compatible layout


def init_params(key, state_size, hidden_size, action_size):
    """PyTorch-nn.Linear-style params. Weights are (out_features, in_features)."""
    def linear(k, fan_in, fan_out):
        kw, kb = jax.random.split(k)
        bound = 1.0 / math.sqrt(fan_in)
        w = jax.random.uniform(kw, (fan_out, fan_in), jnp.float32, -bound, bound)
        b = jax.random.uniform(kb, (fan_out,), jnp.float32, -bound, bound)
        return w, b

    keys = jax.random.split(key, 5)
    w1, b1 = linear(keys[0], state_size, hidden_size)
    w2, b2 = linear(keys[1], hidden_size, hidden_size)
    w3, b3 = linear(keys[2], hidden_size, hidden_size)
    w4, b4 = linear(keys[3], hidden_size, action_size)
    wls, bls = linear(keys[4], hidden_size, action_size)
    return dict(w1=w1, b1=b1, w2=w2, b2=b2, w3=w3, b3=b3,
                w4=w4, b4=b4, wls=wls, bls=bls)


if __name__ == "__main__":
    # Small shapes consistent with the module: batch of states -> actions.
    batch = 8
    state_size = 16
    hidden_size = 32
    action_size = 8

    root = jax.random.PRNGKey(0)
    k_params, k_x, k_eps = jax.random.split(root, 3)

    params = init_params(k_params, state_size, hidden_size, action_size)
    x = jax.random.normal(k_x, (batch, state_size), jnp.float32)
    eps = jax.random.normal(k_eps, (batch, action_size), jnp.float32)  # rsample noise

    # f32 weights here so the reference check holds at tight tolerance; use
    # compute_dtype=jnp.bfloat16 (and bf16 x / out_dtype) on v6e/v7x for the HBM win.
    kparams = prepare_kernel_params(params, compute_dtype=jnp.float32)

    a, logp_pi = gaussian_policy_forward(x, kparams, eps)
    jax.block_until_ready((a, logp_pi))

    # Pure-JAX reference (same math as the PyTorch module's stochastic path).
    def ref(x, p, eps):
        elu = lambda v: jnp.where(v > 0, v, jnp.exp(jnp.minimum(v, 0.0)) - 1.0)
        h = elu(x @ p["w1"].T + p["b1"])
        h = elu(h @ p["w2"].T + p["b2"])
        h = elu(h @ p["w3"].T + p["b3"])
        mu = h @ p["w4"].T + p["b4"]
        log_std = jnp.clip(h @ p["wls"].T + p["bls"], -20.0, 2.0)
        std = jnp.exp(log_std)
        a = mu + std * eps
        lp = -0.5 * ((a - mu) / std) ** 2 - log_std - 0.5 * math.log(2 * math.pi)
        return a, lp.sum(-1)

    a_ref, lp_ref = ref(x, params, eps)
    assert a.shape == (batch, action_size) and logp_pi.shape == (batch,)
    assert jnp.allclose(a, a_ref, atol=1e-5, rtol=1e-5)
    assert jnp.allclose(logp_pi, lp_ref, atol=1e-5, rtol=1e-5)

    print("KERNEL_OK")
</pallas_src>

<mosaic_0001>
module attributes {stable_mosaic.version = 11 : i64} {
  func.func @gaussian_policy_kernel(%arg0: i32, %arg1: memref<128x16xf32, #tpu.memory_space<vmem>>, %arg2: memref<32x16xf32, #tpu.memory_space<vmem>>, %arg3: memref<32x1xf32, #tpu.memory_space<vmem>>, %arg4: memref<32x32xf32, #tpu.memory_space<vmem>>, %arg5: memref<32x1xf32, #tpu.memory_space<vmem>>, %arg6: memref<32x32xf32, #tpu.memory_space<vmem>>, %arg7: memref<32x1xf32, #tpu.memory_space<vmem>>, %arg8: memref<16x32xf32, #tpu.memory_space<vmem>>, %arg9: memref<16x1xf32, #tpu.memory_space<vmem>>, %arg10: memref<128x8xf32, #tpu.memory_space<vmem>>, %arg11: memref<8x128xf32, #tpu.memory_space<vmem>>, %arg12: memref<1x128xf32, #tpu.memory_space<vmem>>) attributes {dimension_semantics = [#tpu.dimension_semantics<parallel>], iteration_bounds = array<i64: 1>, scalar_prefetch = 0 : i64, scratch_operands = 0 : i64, tpu.core_type = #tpu.core_type<tc>, window_params = [{transform_indices = @transform_0, window_bounds = array<i64: 128, 16>}, {pipeline_mode = #tpu.pipeline_mode<synchronous>, transform_indices = @transform_1, window_bounds = array<i64: 32, 16>}, {pipeline_mode = #tpu.pipeline_mode<synchronous>, transform_indices = @transform_2, window_bounds = array<i64: 32, 1>}, {pipeline_mode = #tpu.pipeline_mode<synchronous>, transform_indices = @transform_3, window_bounds = array<i64: 32, 32>}, {pipeline_mode = #tpu.pipeline_mode<synchronous>, transform_indices = @transform_4, window_bounds = array<i64: 32, 1>}, {pipeline_mode = #tpu.pipeline_mode<synchronous>, transform_indices = @transform_5, window_bounds = array<i64: 32, 32>}, {pipeline_mode = #tpu.pipeline_mode<synchronous>, transform_indices = @transform_6, window_bounds = array<i64: 32, 1>}, {pipeline_mode = #tpu.pipeline_mode<synchronous>, transform_indices = @transform_7, window_bounds = array<i64: 16, 32>}, {pipeline_mode = #tpu.pipeline_mode<synchronous>, transform_indices = @transform_8, window_bounds = array<i64: 16, 1>}, {transform_indices = @transform_9, window_bounds = array<i64: 128, 8>}, {transform_indices = @transform_10, window_bounds = array<i64: 8, 128>}, {transform_indices = @transform_11, window_bounds = array<i64: 1, 128>}]} {
    %c0 = arith.constant 0 : index
    %c0_0 = arith.constant 0 : index
    %0 = vector.load %arg1[%c0, %c0_0] : memref<128x16xf32, #tpu.memory_space<vmem>>, vector<128x16xf32>
    %c0_1 = arith.constant 0 : index
    %c0_2 = arith.constant 0 : index
    %1 = vector.load %arg2[%c0_1, %c0_2] : memref<32x16xf32, #tpu.memory_space<vmem>>, vector<32x16xf32>
    %cst = arith.constant dense<0.000000e+00> : vector<32x128xf32>
    %2 = tpu.matmul %1, %0, %cst {dimension_numbers = #tpu.dot_dimension_numbers<[1], [1], [0], [0], [0, 0, 1, 0], [], []>} : vector<32x16xf32>, vector<128x16xf32>, vector<32x128xf32> -> vector<32x128xf32>
    %c0_3 = arith.constant 0 : index
    %c0_4 = arith.constant 0 : index
    %3 = vector.load %arg3[%c0_3, %c0_4] : memref<32x1xf32, #tpu.memory_space<vmem>>, vector<32x1xf32>
    %4 = vector.broadcast %3 : vector<32x1xf32> to vector<32x128xf32>
    %5 = arith.addf %2, %4 : vector<32x128xf32>
    %cst_5 = arith.constant 0.000000e+00 : f32
    %6 = vector.broadcast %cst_5 : f32 to vector<32x128xf32>
    %7 = arith.cmpf ogt, %5, %6 : vector<32x128xf32>
    %cst_6 = arith.constant 0.000000e+00 : f32
    %8 = vector.broadcast %cst_6 : f32 to vector<32x128xf32>
    %9 = arith.minimumf %5, %8 : vector<32x128xf32>
    %10 = math.exp %9 : vector<32x128xf32>
    %cst_7 = arith.constant 1.000000e+00 : f32
    %11 = vector.broadcast %cst_7 : f32 to vector<32x128xf32>
    %12 = arith.subf %10, %11 : vector<32x128xf32>
    %13 = arith.select %7, %5, %12 : vector<32x128xi1>, vector<32x128xf32>
    %c0_8 = arith.constant 0 : index
    %c0_9 = arith.constant 0 : index
    %14 = vector.load %arg4[%c0_8, %c0_9] : memref<32x32xf32, #tpu.memory_space<vmem>>, vector<32x32xf32>
    %cst_10 = arith.constant dense<0.000000e+00> : vector<32x128xf32>
    %15 = tpu.matmul %14, %13, %cst_10 {dimension_numbers = #tpu.dot_dimension_numbers<[1], [0], [0], [1], [0, 0, 1, 1], [], []>} : vector<32x32xf32>, vector<32x128xf32>, vector<32x128xf32> -> vector<32x128xf32>
    %c0_11 = arith.constant 0 : index
    %c0_12 = arith.constant 0 : index
    %16 = vector.load %arg5[%c0_11, %c0_12] : memref<32x1xf32, #tpu.memory_space<vmem>>, vector<32x1xf32>
    %17 = vector.broadcast %16 : vector<32x1xf32> to vector<32x128xf32>
    %18 = arith.addf %15, %17 : vector<32x128xf32>
    %cst_13 = arith.constant 0.000000e+00 : f32
    %19 = vector.broadcast %cst_13 : f32 to vector<32x128xf32>
    %20 = arith.cmpf ogt, %18, %19 : vector<32x128xf32>
    %cst_14 = arith.constant 0.000000e+00 : f32
    %21 = vector.broadcast %cst_14 : f32 to vector<32x128xf32>
    %22 = arith.minimumf %18, %21 : vector<32x128xf32>
    %23 = math.exp %22 : vector<32x128xf32>
    %cst_15 = arith.constant 1.000000e+00 : f32
    %24 = vector.broadcast %cst_15 : f32 to vector<32x128xf32>
    %25 = arith.subf %23, %24 : vector<32x128xf32>
    %26 = arith.select %20, %18, %25 : vector<32x128xi1>, vector<32x128xf32>
    %c0_16 = arith.constant 0 : index
    %c0_17 = arith.constant 0 : index
    %27 = vector.load %arg6[%c0_16, %c0_17] : memref<32x32xf32, #tpu.memory_space<vmem>>, vector<32x32xf32>
    %cst_18 = arith.constant dense<0.000000e+00> : vector<32x128xf32>
    %28 = tpu.matmul %27, %26, %cst_18 {dimension_numbers = #tpu.dot_dimension_numbers<[1], [0], [0], [1], [0, 0, 1, 1], [], []>} : vector<32x32xf32>, vector<32x128xf32>, vector<32x128xf32> -> vector<32x128xf32>
    %c0_19 = arith.constant 0 : index
    %c0_20 = arith.constant 0 : index
    %29 = vector.load %arg7[%c0_19, %c0_20] : memref<32x1xf32, #tpu.memory_space<vmem>>, vector<32x1xf32>
    %30 = vector.broadcast %29 : vector<32x1xf32> to vector<32x128xf32>
    %31 = arith.addf %28, %30 : vector<32x128xf32>
    %cst_21 = arith.constant 0.000000e+00 : f32
    %32 = vector.broadcast %cst_21 : f32 to vector<32x128xf32>
    %33 = arith.cmpf ogt, %31, %32 : vector<32x128xf32>
    %cst_22 = arith.constant 0.000000e+00 : f32
    %34 = vector.broadcast %cst_22 : f32 to vector<32x128xf32>
    %35 = arith.minimumf %31, %34 : vector<32x128xf32>
    %36 = math.exp %35 : vector<32x128xf32>
    %cst_23 = arith.constant 1.000000e+00 : f32
    %37 = vector.broadcast %cst_23 : f32 to vector<32x128xf32>
    %38 = arith.subf %36, %37 : vector<32x128xf32>
    %39 = arith.select %33, %31, %38 : vector<32x128xi1>, vector<32x128xf32>
    %c0_24 = arith.constant 0 : index
    %c0_25 = arith.constant 0 : index
    %40 = vector.load %arg8[%c0_24, %c0_25] : memref<16x32xf32, #tpu.memory_space<vmem>>, vector<16x32xf32>
    %cst_26 = arith.constant dense<0.000000e+00> : vector<16x128xf32>
    %41 = tpu.matmul %40, %39, %cst_26 {dimension_numbers = #tpu.dot_dimension_numbers<[1], [0], [0], [1], [0, 0, 1, 1], [], []>} : vector<16x32xf32>, vector<32x128xf32>, vector<16x128xf32> -> vector<16x128xf32>
    %c0_27 = arith.constant 0 : index
    %c0_28 = arith.constant 0 : index
    %42 = vector.load %arg9[%c0_27, %c0_28] : memref<16x1xf32, #tpu.memory_space<vmem>>, vector<16x1xf32>
    %43 = vector.broadcast %42 : vector<16x1xf32> to vector<16x128xf32>
    %44 = arith.addf %41, %43 : vector<16x128xf32>
    %45 = vector.extract_strided_slice %44 {offsets = [0, 0], sizes = [8, 128], strides = [1, 1]} : vector<16x128xf32> to vector<8x128xf32>
    %46 = vector.extract_strided_slice %44 {offsets = [8, 0], sizes = [8, 128], strides = [1, 1]} : vector<16x128xf32> to vector<8x128xf32>
    %cst_29 = arith.constant -2.000000e+01 : f32
    %cst_30 = arith.constant 2.000000e+00 : f32
    %47 = vector.broadcast %cst_29 : f32 to vector<8x128xf32>
    %48 = arith.maximumf %47, %46 : vector<8x128xf32>
    %49 = vector.broadcast %cst_30 : f32 to vector<8x128xf32>
    %50 = arith.minimumf %49, %48 : vector<8x128xf32>
    %51 = math.exp %50 : vector<8x128xf32>
    %c0_31 = arith.constant 0 : index
    %c0_32 = arith.constant 0 : index
    %52 = vector.load %arg10[%c0_31, %c0_32] : memref<128x8xf32, #tpu.memory_space<vmem>>, vector<128x8xf32>
    %53 = tpu.transpose %52, [1, 0] : vector<128x8xf32> -> vector<8x128xf32>
    %54 = arith.mulf %51, %53 : vector<8x128xf32>
    %55 = arith.addf %45, %54 : vector<8x128xf32>
    %cst_33 = arith.constant -5.000000e-01 : f32
    %56 = vector.broadcast %cst_33 : f32 to vector<8x128xf32>
    %57 = arith.mulf %56, %53 : vector<8x128xf32>
    %58 = arith.mulf %57, %53 : vector<8x128xf32>
    %59 = arith.subf %58, %50 : vector<8x128xf32>
    %cst_34 = arith.constant 0.918938517 : f32
    %60 = vector.broadcast %cst_34 : f32 to vector<8x128xf32>
    %61 = arith.subf %59, %60 : vector<8x128xf32>
    %c0_35 = arith.constant 0 : index
    %c0_36 = arith.constant 0 : index
    %62 = vector.load %arg11[%c0_35, %c0_36] : memref<8x128xf32, #tpu.memory_space<vmem>>, vector<8x128xf32>
    tpu.vector_store %arg11[%c0_35, %c0_36], %55 {strides = array<i32>} : memref<8x128xf32, #tpu.memory_space<vmem>>, vector<8x128xf32>,
    %cst_37 = arith.constant dense<0.000000e+00> : vector<128xf32>
    %63 = vector.multi_reduction <add>, %61, %cst_37 [0] : vector<8x128xf32> to vector<128xf32>
    %64 = vector.shape_cast %63 : vector<128xf32> to vector<1x128xf32>
    %c0_38 = arith.constant 0 : index
    %c0_39 = arith.constant 0 : index
    %65 = vector.load %arg12[%c0_38, %c0_39] : memref<1x128xf32, #tpu.memory_space<vmem>>, vector<1x128xf32>
    tpu.vector_store %arg12[%c0_38, %c0_39], %64 {strides = array<i32>} : memref<1x128xf32, #tpu.memory_space<vmem>>, vector<1x128xf32>,
    return
  }
  func.func @transform_0(%arg0: i32) -> (i32, i32) {
    %c0_i32 = arith.constant 0 : i32
    %c0_i32_0 = arith.constant 0 : i32
    return %arg0, %c0_i32 : i32, i32
  }
  func.func @transform_1(%arg0: i32) -> (i32, i32) {
    %c0_i32 = arith.constant 0 : i32
    %c0_i32_0 = arith.constant 0 : i32
    %c0_i32_1 = arith.constant 0 : i32
    return %c0_i32, %c0_i32_0 : i32, i32
  }
  func.func @transform_2(%arg0: i32) -> (i32, i32) {
    %c0_i32 = arith.constant 0 : i32
    %c0_i32_0 = arith.constant 0 : i32
    %c0_i32_1 = arith.constant 0 : i32
    return %c0_i32, %c0_i32_0 : i32, i32
  }
  func.func @transform_3(%arg0: i32) -> (i32, i32) {
    %c0_i32 = arith.constant 0 : i32
    %c0_i32_0 = arith.constant 0 : i32
    %c0_i32_1 = arith.constant 0 : i32
    return %c0_i32, %c0_i32_0 : i32, i32
  }
  func.func @transform_4(%arg0: i32) -> (i32, i32) {
    %c0_i32 = arith.constant 0 : i32
    %c0_i32_0 = arith.constant 0 : i32
    %c0_i32_1 = arith.constant 0 : i32
    return %c0_i32, %c0_i32_0 : i32, i32
  }
  func.func @transform_5(%arg0: i32) -> (i32, i32) {
    %c0_i32 = arith.constant 0 : i32
    %c0_i32_0 = arith.constant 0 : i32
    %c0_i32_1 = arith.constant 0 : i32
    return %c0_i32, %c0_i32_0 : i32, i32
  }
  func.func @transform_6(%arg0: i32) -> (i32, i32) {
    %c0_i32 = arith.constant 0 : i32
    %c0_i32_0 = arith.constant 0 : i32
    %c0_i32_1 = arith.constant 0 : i32
    return %c0_i32, %c0_i32_0 : i32, i32
  }
  func.func @transform_7(%arg0: i32) -> (i32, i32) {
    %c0_i32 = arith.constant 0 : i32
    %c0_i32_0 = arith.constant 0 : i32
    %c0_i32_1 = arith.constant 0 : i32
    return %c0_i32, %c0_i32_0 : i32, i32
  }
  func.func @transform_8(%arg0: i32) -> (i32, i32) {
    %c0_i32 = arith.constant 0 : i32
    %c0_i32_0 = arith.constant 0 : i32
    %c0_i32_1 = arith.constant 0 : i32
    return %c0_i32, %c0_i32_0 : i32, i32
  }
  func.func @transform_9(%arg0: i32) -> (i32, i32) {
    %c0_i32 = arith.constant 0 : i32
    %c0_i32_0 = arith.constant 0 : i32
    return %arg0, %c0_i32 : i32, i32
  }
  func.func @transform_10(%arg0: i32) -> (i32, i32) {
    %c0_i32 = arith.constant 0 : i32
    %c0_i32_0 = arith.constant 0 : i32
    return %c0_i32, %arg0 : i32, i32
  }
  func.func @transform_11(%arg0: i32) -> (i32, i32) {
    %c0_i32 = arith.constant 0 : i32
    %c0_i32_0 = arith.constant 0 : i32
    return %c0_i32, %arg0 : i32, i32
  }
}

</mosaic_0001>

<bundles_post_ra>
// kernel: tpu_custom_call.1
= control target key start
LH: loop header
LB: loop body
LE: loop exit
PB: predicated region body
PF: predicated region fallthrough
CT: control target
= control target key end

     0   :  { %17 = vsyncpa [#allocation3], 0  ;;  %vm83_vm0 = vcmask 130048   ;;  %s931_s0 = inlined_call_operand.vmem [shape: f32[128,16], index: 0, kind: input, shape index: {}]   ;;  %s932_s1 = inlined_call_operand.vmem [shape: f32[32,16], index: 1, kind: input, shape index: {}]   ;;  %s933_s2 = inlined_call_operand.vmem [shape: f32[32,1], index: 2, kind: input, shape index: {}]   ;;  %s934_s3 = inlined_call_operand.vmem [shape: f32[32,32], index: 3, kind: input, shape index: {}]   ;;  %s935_s4 = inlined_call_operand.vmem [shape: f32[32,1], index: 4, kind: input, shape index: {}]   ;;  %s936_s5 = inlined_call_operand.vmem [shape: f32[32,32], index: 5, kind: input, shape index: {}]   ;;  %s937_s6 = inlined_call_operand.vmem [shape: f32[32,1], index: 6, kind: input, shape index: {}]   ;;  %s938_s7 = inlined_call_operand.vmem [shape: f32[16,32], index: 7, kind: input, shape index: {}]   ;;  %s939_s8 = inlined_call_operand.vmem [shape: f32[16,1], index: 8, kind: input, shape index: {}]   ;;  %s940_s9 = inlined_call_operand.vmem [shape: f32[128,8], index: 9, kind: input, shape index: {}]   ;;  %s941_s10 = inlined_call_operand.hbm [shape: f32[8,128], index: 10, kind: output, shape index: {0}]   ;;  %s942_s11 = inlined_call_operand.hbm [shape: f32[1,128], index: 11, kind: output, shape index: {1}]  }
   0x1   :  { %v54_v0 = vld [vmem:[%s931_s0 + $0x78] sm:$0xff]  ;;  %v53_v1 = vld [vmem:[%s931_s0 + $0x70] sm:$0xff] }
   0x2   :  { %525 = vmatpush.xpose.msk.msra.mxu0 %vm83_vm0, %v54_v0 }
   0x3   :  { %18 = vsyncpa [#allocation5], 0  ;;  %v52_v2 = vld [vmem:[%s931_s0 + $0x68] sm:$0xff]  ;;  %v51_v3 = vld [vmem:[%s931_s0 + $0x60] sm:$0xff]  ;;  %v652_v9 = vmov 0   ;;  %vm225_vm5 = vcmask 261120  }
   0x4   :  { %v50_v4 = vld [vmem:[%s931_s0 + $0x58] sm:$0xff]  ;;  %v49_v5 = vld [vmem:[%s931_s0 + $0x50] sm:$0xff]  ;;  %v48_v6 = vld [vmem:[%s931_s0 + $0x48] sm:$0xff]  ;;  %571 = vset.pattern.permute.xlu0 %v652_v9  ;;  %572 = vset.pattern.permute.xlu1 %v652_v9  ;;  %s653_s20 = smov [#allocation2]   ;;  %s500_s23 = sshll.u32 %s941_s10, 4  ;;  %s501_s23 = int_to_ptr.hbm [resolvable:$true] %s500_s23 }
   0x5   :  { %v62_v7 = vld [vmem:[%s933_s2 + $0x18] sm:$0xff]  ;;  %v47_v8 = vld [vmem:[%s931_s0 + $0x40] sm:$0xff]  ;;  %573 = vset.pattern.permute.xlu2 %v652_v9  ;;  %v60_v11 = vld [vmem:[%s933_s2 + $0x8] sm:$0xff]  ;;  %s654_s24 = smov [#allocation4]   ;;  %s511_s27 = sshll.u32 %s942_s11, 4  ;;  %s512_s27 = int_to_ptr.hbm [resolvable:$true] %s511_s27 }
   0x6   :  { %526 = vmatpush.xpose.msk.msra.mxu0 %vm83_vm0, %v53_v1  ;;  %80 = vperm.xlu0 %571, %v62_v7   ;;  %v46_v10 = vld [vmem:[%s931_s0 + $0x38] sm:$0xff]  ;;  %v61_v12 = vld [vmem:[%s933_s2 + $0x10] sm:$0xff]  ;;  %v44_v14 = vld [vmem:[%s931_s0 + $0x28] sm:$0xff]  ;;  %s509_s25 = sshll.u32 %s654_s24, 4  ;;  %s510_s25 = int_to_ptr.vmem [resolvable:$true] %s509_s25 }
   0x7   :  { %70 = vperm.xlu1 %572, %v60_v11   ;;  %v45_v13 = vld [vmem:[%s931_s0 + $0x30] sm:$0xff]  ;;  %v59_v15 = vld [vmem:[%s933_s2] sm:$0xff]  ;;  %v202_v16 = vld [vmem:[%s935_s4 + $0x8] sm:$0xff] }
   0x8   :  { %v43_v17 = vld [vmem:[%s931_s0 + $0x20] sm:$0xff]  ;;  %v42_v18 = vld [vmem:[%s931_s0 + $0x18] sm:$0xff]  ;;  %v297_v20 = vld [vmem:[%s937_s6 + $0x10] sm:$0xff] }
   0x9   :  { %v201_v19 = vld [vmem:[%s935_s4] sm:$0xff]  ;;  %v41_v21 = vld [vmem:[%s931_s0 + $0x10] sm:$0xff]  ;;  %v40_v22 = vld [vmem:[%s931_s0 + $0x8] sm:$0xff] }
   0xa   :  { %527 = vmatpush.xpose.msk.msra.mxu0 %vm83_vm0, %v52_v2  ;;  %v296_v23 = vld [vmem:[%s937_s6 + $0x8] sm:$0xff]  ;;  %v386_v24 = vld [vmem:[%s939_s8] sm:$0xff]  ;;  %v57_v29 = vld [vmem:[%s932_s1 + $0x10] sm:$0xff] }
   0xb   :  { %v39_v25 = vld [vmem:[%s931_s0] sm:$0xff]  ;;  %v387_v27 = vld [vmem:[%s939_s8 + $0x8] sm:$0xff]  ;;  %v58_v30 = vld [vmem:[%s932_s1 + $0x18] sm:$0xff] }
   0xc   :  { %v55_v26 = vld [vmem:[%s932_s1] sm:$0xff]  ;;  %v56_v28 = vld [vmem:[%s932_s1 + $0x8] sm:$0xff]  ;;  %v204_v59 = vld [vmem:[%s935_s4 + $0x18] sm:$0xff] }
   0xd   :  { %222 = vperm.xlu2 %573, %v204_v59   ;;  %v197_v63 = vld [vmem:[%s934_s3] sm:$0xff]  ;;  %v203_v1 = vld [vmem:[%s935_s4 + $0x10] sm:$0xff]  ;;  %v198_v2 = vld [vmem:[%s934_s3 + $0x8] sm:$0xff] }
   0xe   :  { %528 = vmatpush.xpose.msk.msra.mxu0 %vm83_vm0, %v51_v3  ;;  %75 = vperm.xlu0 %571, %v61_v12   ;;  %v298_v3 = vld [vmem:[%s937_s6 + $0x18] sm:$0xff] }
   0xf   :  { %65 = vperm.xlu1 %572, %v59_v15   ;;  %v434_v59 = vld [vmem:[%s940_s9 + $0x18] sm:$0xff] }
  0x12   :  { %529 = vmatpush.xpose.msk.msra.mxu0 %vm83_vm0, %v50_v4  ;;  %v199_v4 = vld [vmem:[%s934_s3 + $0x10] sm:$0xff] }
  0x15   :  { %217 = vperm.xlu2 %573, %v203_v1  }
  0x16   :  { %530 = vmatpush.xpose.msk.msra.mxu0 %vm83_vm0, %v49_v5  ;;  %212 = vperm.xlu0 %571, %v202_v16   ;;  %v295_v5 = vld [vmem:[%s937_s6] sm:$0xff] }
  0x17   :  { %207 = vperm.xlu1 %572, %v201_v19  }
  0x1a   :  { %531 = vmatpush.xpose.msk.msra.mxu0 %vm83_vm0, %v48_v6  ;;  %v200_v6 = vld [vmem:[%s934_s3 + $0x18] sm:$0xff] }
  0x1d   :  { %316 = vperm.xlu2 %573, %v298_v3   ;;  %v435_v3 = vld [vmem:[%s940_s9 + $0x20] sm:$0xff] }
  0x1e   :  { %532 = vmatpush.xpose.msk.msra.mxu0 %vm83_vm0, %v47_v8  ;;  %311 = vperm.xlu0 %571, %v297_v20  }
  0x1f   :  { %306 = vperm.xlu1 %572, %v296_v23  }
  0x22   :  { %533 = vmatpush.xpose.msk.msra.mxu0 %vm83_vm0, %v46_v10 }
  0x25   :  { %301 = vperm.xlu2 %573, %v295_v5  }
  0x26   :  { %534 = vmatpush.xpose.msk.msra.mxu0 %vm83_vm0, %v45_v13  ;;  %390 = vperm.xlu0 %571, %v386_v24  }
  0x27   :  { %395 = vperm.xlu1 %572, %v387_v27  }
  0x2a   :  { %535 = vmatpush.xpose.msk.msra.mxu0 %vm83_vm0, %v44_v14 }
  0x2e   :  { %536 = vmatpush.xpose.msk.msra.mxu0 %vm83_vm0, %v43_v17 }
  0x32   :  { %537 = vmatpush.xpose.msk.msra.mxu0 %vm83_vm0, %v42_v18 }
  0x36   :  { %538 = vmatpush.xpose.msk.msra.mxu0 %vm83_vm0, %v41_v21 }
  0x3a   :  { %539 = vmatpush.xpose.msk.msra.mxu0 %vm83_vm0, %v40_v22 }
  0x3e   :  { %540 = vmatpush.xpose.msk.msra.mxu0 %vm83_vm0, %v39_v25 }
  0x41   :  { %541 = vmatmul.msk.f32.vlgmr.msra.gmra.mxu0 %vm83_vm0, %v55_v26 }
  0x49   :  { %542 = vmatmul.msk.f32.gmra.mxu0 %vm83_vm0, %v56_v28 }
  0x51   :  { %543 = vmatmul.msk.f32.gmra.mxu0 %vm83_vm0, %v57_v29 }
  0x59   :  { %544 = vmatmul.msk.f32.gmra.mxu0 %vm83_vm0, %v58_v30 }
  0x67   :  { %v223_v8 = vpop.permute.xlu2 %222 }
  0x6f   :  { %v218_v10 = vpop.permute.xlu2 %217 }
  0x78   :  { %v81_v32 = vpop.permute.xlu0 %80 }
  0x79   :  { %v71_v34 = vpop.permute.xlu1 %70 }
  0x80   :  { %v76_v35 = vpop.permute.xlu0 %75 }
  0x81   :  { %v66_v39 = vpop.permute.xlu1 %65 }
  0x88   :  { %v213_v12 = vpop.permute.xlu0 %212 }
  0x89   :  { %v208_v15 = vpop.permute.xlu1 %207 }
  0xbe   :  { %v161_v31 = vpop.f32.mrf.mxu0 }
  0xbf   :  { %v162_v40 = vadd.f32 %v161_v31, %v66_v39 }
  0xc1   :  { %v177_v44 = vmin.f32 %v162_v40, 0.0  ;;  %vm173_vm4 = vcmp.gt.f32.partialorder %v162_v40, 0.0 }
  0xc3   :  { %v181_v49 = vmul.f32 1.442695, %v177_v44 }
  0xc6   :  { %v164_v33 = vpop.f32.mrf.mxu0 }
  0xc7   :  { %v165_v38 = vadd.f32 %v164_v33, %v71_v34 }
  0xc9   :  { %v178_v42 = vmin.f32 %v165_v38, 0.0  ;;  %vm174_vm3 = vcmp.gt.f32.partialorder %v165_v38, 0.0 }
  0xcb   :  { %v183_v47 = vmul.f32 1.442695, %v178_v42  ;;  %v294_v42 = vld [vmem:[%s936_s5 + $0x18] sm:$0xff] }
  0xce   :  { %v167_v36 = vpop.f32.mrf.mxu0 }
  0xcf   :  { %v168_v37 = vadd.f32 %v167_v36, %v76_v35 }
  0xd1   :  { %v179_v41 = vmin.f32 %v168_v37, 0.0  ;;  %vm175_vm2 = vcmp.gt.f32.partialorder %v168_v37, 0.0 }
  0xd3   :  { %v185_v45 = vmul.f32 1.442695, %v179_v41  ;;  %v293_v41 = vld [vmem:[%s936_s5 + $0x10] sm:$0xff] }
  0xd5   :  { %574 = vpow2.f32 %v185_v45 }
  0xd6   :  { %v170_v43 = vpop.f32.mrf.mxu0  ;;  %576 = vpow2.f32 %v183_v47  ;;  %v317_v47 = vpop.permute.xlu2 %316 }
  0xd7   :  { %v171_v46 = vadd.f32 %v170_v43, %v81_v32  ;;  %v431_v43 = vld [vmem:[%s940_s9] sm:$0xff] }
  0xd8   :  { %447 = vxpose.xlu2.b32.start [1/16] (narrow) %v431_v43, 8 }
  0xd9   :  { %v180_v48 = vmin.f32 %v171_v46, 0.0  ;;  %vm176_vm1 = vcmp.gt.f32.partialorder %v171_v46, 0.0 }
  0xdb   :  { %v187_v50 = vmul.f32 1.442695, %v180_v48  ;;  %v575_v51 = vpop.eup %574  ;;  %v312_v48 = vpop.permute.xlu0 %311 }
  0xdc   :  { %v577_v52 = vpop.eup %576  ;;  %v547_v55 = vadd.f32 -1.0, %v575_v51  ;;  %v307_v51 = vpop.permute.xlu1 %306 }
  0xdd   :  { %578 = vpow2.f32 %v187_v50  ;;  %v546_v58 = vadd.f32 -1.0, %v577_v52  ;;  %v433_v50 = vld [vmem:[%s940_s9 + $0x10] sm:$0xff] }
  0xde   :  { %580 = vpow2.f32 %v181_v49  ;;  %v195_v60 = vsel %vm175_vm2, %v168_v37, %v547_v55 }
  0xdf   :  { %v194_v62 = vsel %vm174_vm3, %v165_v38, %v546_v58  ;;  %v291_v38 = vld [vmem:[%s936_s5] sm:$0xff] }
  0xe3   :  { %v579_v53 = vpop.eup %578 }
  0xe4   :  { %v548_v54 = vadd.f32 -1.0, %v579_v53  ;;  %v581_v56 = vpop.eup %580 }
  0xe5   :  { %v545_v61 = vadd.f32 -1.0, %v581_v56 }
  0xe6   :  { %v196_v57 = vsel %vm176_vm1, %v171_v46, %v548_v54  ;;  %v432_v46 = vld [vmem:[%s940_s9 + $0x8] sm:$0xff]  ;;  %v302_v54 = vpop.permute.xlu2 %301 }
  0xe7   :  { %250 = vmatpush.msra.mxu1 %v196_v57  ;;  %v193_v0 = vsel %vm173_vm4, %v162_v40, %v545_v61  ;;  %v292_v40 = vld [vmem:[%s936_s5 + $0x8] sm:$0xff]  ;;  %448 = vxpose.xlu2.b32.cont [2/16] (narrow) %v432_v46, 8 }
  0xe9   :  { %251 = vmatpush.msra.mxu1 %v195_v60 }
  0xeb   :  { %252 = vmatpush.msra.mxu1 %v194_v62 }
  0xed   :  { %253 = vmatpush.msra.mxu1 %v193_v0 }
  0xee   :  { %549 = vmatmul.msk.f32.vlgmr.msra.gmra.mxu1 %vm225_vm5, %v197_v63 }
  0xef   :  { %449 = vxpose.xlu2.b32.cont [3/16] (narrow) %v433_v50, 8 }
  0xf6   :  { %550 = vmatmul.msk.f32.gmra.mxu1 %vm225_vm5, %v198_v2 }
  0xf7   :  { %450 = vxpose.xlu2.b32.cont [4/16] (narrow) %v434_v59, 8 }
  0xfe   :  { %551 = vmatmul.msk.f32.gmra.mxu1 %vm225_vm5, %v199_v4 }
  0xff   :  { %451 = vxpose.xlu2.b32.cont [5/16] (narrow) %v435_v3, 8 }
 0x106   :  { %552 = vmatmul.msk.f32.gmra.mxu1 %vm225_vm5, %v200_v6 }
 0x16b   :  { %v255_v7 = vpop.f32.mrf.mxu1 }
 0x16c   :  { %v256_v16 = vadd.f32 %v255_v7, %v208_v15 }
 0x16e   :  { %v271_v20 = vmin.f32 %v256_v16, 0.0  ;;  %vm267_vm9 = vcmp.gt.f32.partialorder %v256_v16, 0.0 }
 0x170   :  { %v275_v25 = vmul.f32 1.442695, %v271_v20  ;;  %v438_v20 = vld [vmem:[%s940_s9 + $0x38] sm:$0xff] }
 0x173   :  { %v258_v9 = vpop.f32.mrf.mxu1 }
 0x174   :  { %v259_v14 = vadd.f32 %v258_v9, %v213_v12 }
 0x176   :  { %v272_v18 = vmin.f32 %v259_v14, 0.0  ;;  %vm268_vm8 = vcmp.gt.f32.partialorder %v259_v14, 0.0 }
 0x178   :  { %v277_v23 = vmul.f32 1.442695, %v272_v18  ;;  %v437_v18 = vld [vmem:[%s940_s9 + $0x30] sm:$0xff] }
 0x17b   :  { %v261_v11 = vpop.f32.mrf.mxu1 }
 0x17c   :  { %v262_v13 = vadd.f32 %v261_v11, %v218_v10  ;;  %v436_v10 = vld [vmem:[%s940_s9 + $0x28] sm:$0xff] }
 0x17d   :  { %452 = vxpose.xlu2.b32.cont [6/16] (narrow) %v436_v10, 8 }
 0x17e   :  { %v273_v17 = vmin.f32 %v262_v13, 0.0  ;;  %vm269_vm7 = vcmp.gt.f32.partialorder %v262_v13, 0.0 }
 0x180   :  { %v279_v21 = vmul.f32 1.442695, %v273_v17 }
 0x182   :  { %582 = vpow2.f32 %v279_v21  ;;  %v439_v21 = vld [vmem:[%s940_s9 + $0x40] sm:$0xff] }
 0x183   :  { %v264_v19 = vpop.f32.mrf.mxu1  ;;  %584 = vpow2.f32 %v277_v23  ;;  %v441_v23 = vld [vmem:[%s940_s9 + $0x50] sm:$0xff] }
 0x184   :  { %v265_v22 = vadd.f32 %v264_v19, %v223_v8  ;;  %v385_v19 = vld [vmem:[%s938_s7 + $0x8] sm:$0xff] }
 0x185   :  { %453 = vxpose.xlu2.b32.cont [7/16] (narrow) %v437_v18, 8 }
 0x186   :  { %v274_v24 = vmin.f32 %v265_v22, 0.0  ;;  %vm270_vm6 = vcmp.gt.f32.partialorder %v265_v22, 0.0 }
 0x188   :  { %v281_v26 = vmul.f32 1.442695, %v274_v24  ;;  %v583_v27 = vpop.eup %582  ;;  %v442_v24 = vld [vmem:[%s940_s9 + $0x58] sm:$0xff] }
 0x189   :  { %v585_v28 = vpop.eup %584  ;;  %v555_v31 = vadd.f32 -1.0, %v583_v27  ;;  %v445_v27 = vld [vmem:[%s940_s9 + $0x70] sm:$0xff] }
 0x18a   :  { %586 = vpow2.f32 %v281_v26  ;;  %v554_v34 = vadd.f32 -1.0, %v585_v28  ;;  %v444_v26 = vld [vmem:[%s940_s9 + $0x68] sm:$0xff]  ;;  %v446_v28 = vld [vmem:[%s940_s9 + $0x78] sm:$0xff] }
 0x18b   :  { %588 = vpow2.f32 %v275_v25  ;;  %v289_v35 = vsel %vm269_vm7, %v262_v13, %v555_v31  ;;  %v443_v25 = vld [vmem:[%s940_s9 + $0x60] sm:$0xff]  ;;  %v396_v31 = vpop.permute.xlu1 %395 }
 0x18c   :  { %v288_v37 = vsel %vm268_vm8, %v259_v14, %v554_v34 }
 0x18d   :  { %454 = vxpose.xlu2.b32.cont [8/16] (narrow) %v438_v20, 8 }
 0x190   :  { %v587_v29 = vpop.eup %586 }
 0x191   :  { %v556_v30 = vadd.f32 -1.0, %v587_v29  ;;  %v589_v32 = vpop.eup %588 }
 0x192   :  { %v553_v36 = vadd.f32 -1.0, %v589_v32 }
 0x193   :  { %v290_v33 = vsel %vm270_vm6, %v265_v22, %v556_v30  ;;  %v440_v22 = vld [vmem:[%s940_s9 + $0x48] sm:$0xff]  ;;  %s498_s9 = sshll.u32 %s653_s20, 4  ;;  %s499_s9 = int_to_ptr.vmem [resolvable:$true] %s498_s9 }
 0x194   :  { %343 = vmatpush.msra.mxu2 %v290_v33  ;;  %v287_v39 = vsel %vm267_vm9, %v256_v16, %v553_v36  ;;  %v384_v16 = vld [vmem:[%s938_s7] sm:$0xff] }
 0x195   :  { %455 = vxpose.xlu2.b32.cont [9/16] (narrow) %v439_v21, 8 }
 0x196   :  { %344 = vmatpush.msra.mxu2 %v289_v35 }
 0x198   :  { %345 = vmatpush.msra.mxu2 %v288_v37 }
 0x19a   :  { %346 = vmatpush.msra.mxu2 %v287_v39 }
 0x19b   :  { %557 = vmatmul.msk.f32.vlgmr.msra.gmra.mxu2 %vm225_vm5, %v291_v38 }
 0x19d   :  { %456 = vxpose.xlu2.b32.cont [10/16] (narrow) %v440_v22, 8 }
 0x1a3   :  { %558 = vmatmul.msk.f32.gmra.mxu2 %vm225_vm5, %v292_v40 }
 0x1a5   :  { %457 = vxpose.xlu2.b32.cont [11/16] (narrow) %v441_v23, 8 }
 0x1ab   :  { %559 = vmatmul.msk.f32.gmra.mxu2 %vm225_vm5, %v293_v41 }
 0x1ad   :  { %458 = vxpose.xlu2.b32.cont [12/16] (narrow) %v442_v24, 8 }
 0x1b3   :  { %560 = vmatmul.msk.f32.gmra.mxu2 %vm225_vm5, %v294_v42 }
 0x1b5   :  { %459 = vxpose.xlu2.b32.cont [13/16] (narrow) %v443_v25, 8 }
 0x1bd   :  { %460 = vxpose.xlu2.b32.cont [14/16] (narrow) %v444_v26, 8 }
 0x1c5   :  { %461 = vxpose.xlu2.b32.cont [15/16] (narrow) %v445_v27, 8 }
 0x1cd   :  { %462 = vxpose.xlu2.b32.end [16/16] (narrow) %v446_v28, 8 }
 0x1ee   :  { %v463_v30 = vpop.trf.xlu2 }
 0x1ef   :  { %v481_v33 = vmul.f32 -0.5, %v463_v30 }
 0x1f1   :  { %v482_v36 = vmul.f32 %v481_v33, %v463_v30 }
 0x21e   :  { %v348_v44 = vpop.f32.mrf.mxu2 }
 0x21f   :  { %v349_v55 = vadd.f32 %v348_v44, %v302_v54  ;;  %v391_v44 = vpop.permute.xlu0 %390 }
 0x221   :  { %v364_v60 = vmin.f32 %v349_v55, 0.0  ;;  %vm360_vm13 = vcmp.gt.f32.partialorder %v349_v55, 0.0 }
 0x223   :  { %v368_v1 = vmul.f32 1.442695, %v364_v60 }
 0x226   :  { %v351_v45 = vpop.f32.mrf.mxu2 }
 0x227   :  { %v352_v53 = vadd.f32 %v351_v45, %v307_v51 }
 0x229   :  { %v365_v57 = vmin.f32 %v352_v53, 0.0  ;;  %vm361_vm12 = vcmp.gt.f32.partialorder %v352_v53, 0.0 }
 0x22b   :  { %v370_v63 = vmul.f32 1.442695, %v365_v57 }
 0x22e   :  { %v354_v49 = vpop.f32.mrf.mxu2 }
 0x22f   :  { %v355_v52 = vadd.f32 %v354_v49, %v312_v48 }
 0x231   :  { %v366_v56 = vmin.f32 %v355_v52, 0.0  ;;  %vm362_vm11 = vcmp.gt.f32.partialorder %v355_v52, 0.0 }
 0x233   :  { %v372_v61 = vmul.f32 1.442695, %v366_v56 }
 0x235   :  { %590 = vpow2.f32 %v372_v61 }
 0x236   :  { %v357_v58 = vpop.f32.mrf.mxu2  ;;  %592 = vpow2.f32 %v370_v63 }
 0x237   :  { %v358_v62 = vadd.f32 %v357_v58, %v317_v47 }
 0x239   :  { %v367_v0 = vmin.f32 %v358_v62, 0.0  ;;  %vm363_vm10 = vcmp.gt.f32.partialorder %v358_v62, 0.0 }
 0x23b   :  { %v374_v2 = vmul.f32 1.442695, %v367_v0  ;;  %v591_v4 = vpop.eup %590 }
 0x23c   :  { %v593_v5 = vpop.eup %592  ;;  %v563_v8 = vadd.f32 -1.0, %v591_v4 }
 0x23d   :  { %594 = vpow2.f32 %v374_v2  ;;  %v562_v12 = vadd.f32 -1.0, %v593_v5 }
 0x23e   :  { %596 = vpow2.f32 %v368_v1  ;;  %v382_v13 = vsel %vm362_vm11, %v355_v52, %v563_v8 }
 0x23f   :  { %v381_v15 = vsel %vm361_vm12, %v352_v53, %v562_v12 }
 0x243   :  { %v595_v6 = vpop.eup %594 }
 0x244   :  { %v564_v7 = vadd.f32 -1.0, %v595_v6  ;;  %v597_v9 = vpop.eup %596 }
 0x245   :  { %v561_v14 = vadd.f32 -1.0, %v597_v9 }
 0x246   :  { %v383_v11 = vsel %vm363_vm10, %v358_v62, %v564_v7 }
 0x247   :  { %416 = vmatpush.msra.mxu3 %v383_v11  ;;  %v380_v17 = vsel %vm360_vm13, %v349_v55, %v561_v14 }
 0x249   :  { %417 = vmatpush.msra.mxu3 %v382_v13 }
 0x24b   :  { %418 = vmatpush.msra.mxu3 %v381_v15 }
 0x24d   :  { %419 = vmatpush.msra.mxu3 %v380_v17 }
 0x24e   :  { %565 = vmatmul.msk.f32.vlgmr.msra.gmra.mxu3 %vm225_vm5, %v384_v16 }
 0x256   :  { %566 = vmatmul.msk.f32.gmra.mxu3 %vm225_vm5, %v385_v19 }
 0x2d1   :  { %v421_v29 = vpop.f32.mrf.mxu3 }
 0x2d2   :  { %v422_v46 = vadd.f32 %v421_v29, %v391_v44 }
 0x2d9   :  { %v424_v32 = vpop.f32.mrf.mxu3 }
 0x2da   :  { %v425_v34 = vadd.f32 %v424_v32, %v396_v31 }
 0x2dc   :  { %v427_v35 = vmax.f32 %v425_v34, -20.0 }
 0x2de   :  { %v428_v37 = vmin.f32 %v427_v35, 2.0 }
 0x2e0   :  { %v429_v38 = vmul.f32 1.442695, %v428_v37  ;;  %v483_v39 = vsub.f32 %v482_v36, %v428_v37 }
 0x2e2   :  { %598 = vpow2.f32 %v429_v38  ;;  %v567_v40 = vadd.f32 -0.9189385, %v483_v39 }
 0x2e4   :  { %v486_v41 = vrot.slane %v567_v40, 4 }
 0x2e6   :  { %v487_v42 = vadd.f32 %v567_v40, %v486_v41 }
 0x2e8   :  { %v599_v43 = vpop.eup %598  ;;  %v488_v45 = vrot.slane %v487_v42, 2 }
 0x2e9   :  { %v479_v47 = vmul.f32 %v599_v43, %v463_v30 }
 0x2ea   :  { %v489_v48 = vadd.f32 %v488_v45, %v487_v42 }
 0x2eb   :  { %v480_v49 = vadd.f32 %v479_v47, %v422_v46 }
 0x2ec   :  { %v490_v50 = vrot.slane %v489_v48, 1 }
 0x2ed   :  { %485 = vst [vmem:[#allocation2] sm:$0xff] %v480_v49 }
 0x2ee   :  { %503 = dma.vmem_to_hbm [thread:$0]  %s499_s9, 128, %s501_s23, [#allocation3]   ;;  %v491_v51 = vadd.f32 %v490_v50, %v489_v48 }
 0x2f0   :  { %492 = vst [vmem:[#allocation4] sm:$0x1] %v491_v51 }
 0x2f1   :  { %514 = dma.vmem_to_hbm [thread:$0]  %s510_s25, 16, %s512_s27, [#allocation5]  }
 0x2f2   :  { %648 = dma.done.wait [#allocation3], 128  }
 0x2f3   :  { %649 = vsyncadd [#allocation3], 4294967168 }
 0x2f4   :  { %650 = dma.done.wait [#allocation5], 16  }
 0x2f5   :  { %651 = vsyncadd [#allocation5], 4294967280 }
 0x2f6   :  { %523 = vsyncpa [#allocation3], 1 }
 0x2f7   :  { %524 = vsyncpa [#allocation5], 1 }

</bundles_post_ra>
